<compile_context>
chip_gen: v5e
topology: v5e:2x2
jax: 0.10.0
libtpu: 0.0.40
codegen_flags: <defaults>
</compile_context>

<pallas_src>
import functools

import jax
import jax.numpy as jnp
from jax import lax
from jax.experimental import pallas as pl
from jax.experimental.pallas import tpu as pltpu

_LANE = 128
_SUBLANE = 8


def _round_up(x, n):
    return (x + n - 1) // n * n


def _episodic_memory_kernel(q_ref, k_ref, v_ref, bias_ref, o_ref,
                            m_scratch, acc_scratch, *, dim, mxu_dtype):
    m_idx = pl.program_id(1)

    @pl.when(m_idx == 0)
    def _init():
        m_scratch[...] = jnp.full_like(m_scratch, -jnp.inf)
        acc_scratch[...] = jnp.zeros_like(acc_scratch)

    q = q_ref[...].astype(mxu_dtype)                    # (tb, D_pad)
    k = k_ref[...].astype(mxu_dtype)                    # (tm, D_pad)

    # scores[b, m] = sum_d q[b, d] * k[m, d]  (contract D directly; no k.T copy)
    scores = lax.dot_general(
        q, k,
        dimension_numbers=(((1,), (1,)), ((), ())),
        preferred_element_type=jnp.float32)             # (tb, tm) f32

    # Additive pad mask streamed from HBM: 0 for valid memory slots, -1e30 for pad.
    scores = scores + bias_ref[...]                     # (tb, tm) + (1, tm)

    # Online (flash) softmax update in f32; m_scratch is lane-replicated (tb, 128).
    m_prev = m_scratch[...]
    m_new = jnp.maximum(m_prev, jnp.max(scores, axis=-1, keepdims=True))
    alpha = jnp.exp(m_prev - m_new)                     # (tb, 128)
    p = jnp.exp(scores - m_new[:, :1])                  # (tb, tm)

    # Values carry a fused "ones" column at lane `dim`, so this single MXU matmul
    # accumulates both the weighted values and the softmax denominator.
    pv = jnp.dot(p.astype(mxu_dtype), v_ref[...].astype(mxu_dtype),
                 preferred_element_type=jnp.float32)    # (tb, V_W)

    acc = acc_scratch[...]
    if acc.shape[1] == alpha.shape[1]:
        acc_scratch[...] = acc * alpha + pv
    else:
        acc_scratch[...] = acc * alpha[:, :1] + pv
    m_scratch[...] = m_new

    @pl.when(m_idx == pl.num_programs(1) - 1)
    def _finalize():
        acc_f = acc_scratch[...]
        # Denominator lives in the fused ones-column (lane index `dim`).
        inv_l = pl.reciprocal(acc_f[:, dim:dim + 1], approx=True)   # EUP slot
        d_out = o_ref.shape[1]
        o_ref[...] = (acc_f[:, :d_out] * inv_l).astype(o_ref.dtype)


def episodic_memory_forward(query, mem_keys, mem_values, *, tb=None, tm=None,
                            mxu_dtype=None):
    """Pallas implementation of EpisodicMemory.forward.

    query:      (B, dim)
    mem_keys:   (memory_size, dim)
    mem_values: (memory_size, dim)
    returns:    (B, dim)
    """
    B, D = query.shape
    M, Dk = mem_keys.shape
    assert D == Dk and mem_values.shape == (M, D)

    in_dtype = query.dtype
    itemsize = jnp.dtype(in_dtype).itemsize

    # Lane-dense feature dim; reserve one extra lane block for the fused
    # denominator column when D is already a multiple of 128.
    d_pad = _round_up(D, _LANE)
    v_w = d_pad if d_pad > D else d_pad + _LANE

    # ---- tile sizes (generation-aware via VMEM capacity) --------------------
    try:
        vmem_cap = int(pltpu.get_tpu_info().vmem_capacity_bytes)
    except Exception:
        vmem_cap = 64 * 1024 * 1024          # conservative (v7x-sized) fallback
    budget = int(vmem_cap * 0.4)             # headroom for compiler temps

    if tb is None:
        if B >= 16:
            # Keep >= 2 steps on the "parallel" batch axis (v7x has 2 TCs),
            # capped at 256 to bound score-tile vreg pressure / spills.
            tb = min(256, _round_up(pl.cdiv(B, 2), _SUBLANE))
        else:
            tb = _round_up(max(B, 1), _SUBLANE)
    if tm is None:
        fixed = (2 * 2 * tb * d_pad * itemsize        # q + out double-buffers
                 + tb * v_w * 4 + tb * _LANE * 4)     # acc + m scratch
        per_tm = (2 * (d_pad + v_w) * itemsize        # K + V double-buffered
                  + 2 * _SUBLANE * 4                  # bias double-buffered
                  + 3 * tb * 4)                       # scores / p f32 temps
        tm = max(budget - fixed, _LANE * per_tm) // per_tm
        tm = max(_LANE, min(1024, (tm // _LANE) * _LANE))
    tm = min(tm, _round_up(M, _LANE))

    b_pad = _round_up(B, tb)
    m_pad = _round_up(M, tm)

    # bf16 matmuls only pay off when D is large enough for the MXU to matter;
    # small-D (module default dim=32) stays in the input dtype for exactness.
    if mxu_dtype is None:
        mxu_dtype = (jnp.bfloat16
                     if (in_dtype == jnp.float32 and d_pad >= 512) else in_dtype)

    # ---- wrapper-side padding (lane-dense blocks, hot loop stays mask-free) -
    q_p = jnp.pad(query, ((0, b_pad - B), (0, d_pad - D)))
    k_p = jnp.pad(mem_keys.astype(in_dtype), ((0, m_pad - M), (0, d_pad - D)))

    v_p = jnp.zeros((m_pad, v_w), in_dtype)
    v_p = v_p.at[:M, :D].set(mem_values.astype(in_dtype))
    v_p = v_p.at[:M, D].set(jnp.asarray(1.0, in_dtype))   # fused denominator col

    col = jnp.arange(m_pad, dtype=jnp.int32)
    bias = jnp.where(col < M, 0.0, -1e30).astype(jnp.float32).reshape(1, m_pad)

    grid = (b_pad // tb, m_pad // tm)
    kernel = functools.partial(_episodic_memory_kernel, dim=D, mxu_dtype=mxu_dtype)

    out = pl.pallas_call(
        kernel,
        out_shape=jax.ShapeDtypeStruct((b_pad, d_pad), in_dtype),
        grid_spec=pltpu.PrefetchScalarGridSpec(
            num_scalar_prefetch=0,
            grid=grid,
            in_specs=[
                pl.BlockSpec((tb, d_pad), lambda b, m: (b, 0)),   # query
                pl.BlockSpec((tm, d_pad), lambda b, m: (m, 0)),   # mem_keys
                pl.BlockSpec((tm, v_w), lambda b, m: (m, 0)),     # mem_values (+ones)
                pl.BlockSpec((1, tm), lambda b, m: (0, m)),       # pad bias
            ],
            out_specs=pl.BlockSpec((tb, d_pad), lambda b, m: (b, 0)),
            scratch_shapes=[
                pltpu.VMEM((tb, _LANE), jnp.float32),   # running max (lane-replicated)
                pltpu.VMEM((tb, v_w), jnp.float32),     # fused output/denominator acc
            ],
        ),
        compiler_params=pltpu.CompilerParams(
            dimension_semantics=("parallel", "arbitrary"),
            vmem_limit_bytes=int(vmem_cap * 0.75),
        ),
    )(q_p, k_p, v_p, bias)

    return out[:B, :D]


def reference_forward(query, mem_keys, mem_values):
    scores = query @ mem_keys.T
    probs = jax.nn.softmax(scores, axis=-1)
    return probs @ mem_values


if __name__ == "__main__":
    # Mirrors the PyTorch module defaults at small scale:
    # dim=32, memory_size=100, a batch of 8 queries. The 100 -> 128 memory pad and
    # 32 -> 128 feature pad exercise the bias-mask and lane-padding paths.
    dim = 32
    memory_size = 100
    batch = 8

    key = jax.random.PRNGKey(0)
    k0, k1, k2 = jax.random.split(key, 3)
    mem_keys = jax.random.normal(k0, (memory_size, dim), dtype=jnp.float32)
    mem_values = jax.random.normal(k1, (memory_size, dim), dtype=jnp.float32)
    query = jax.random.normal(k2, (batch, dim), dtype=jnp.float32)

    out = episodic_memory_forward(query, mem_keys, mem_values)
    out = jax.block_until_ready(out)

    ref = reference_forward(query, mem_keys, mem_values)
    assert out.shape == (batch, dim)
    # approx=True reciprocal introduces ~1e-3 relative error in the softmax
    # normalization; tolerance is set accordingly (matmuls stay f32 at dim=32).
    assert jnp.allclose(out, ref, atol=2e-3, rtol=2e-3), "mismatch vs reference"

    print("KERNEL_OK")
</pallas_src>

<mosaic_0001>
module attributes {stable_mosaic.version = 11 : i64} {
  func.func @_episodic_memory_kernel(%arg0: i32, %arg1: i32, %arg2: memref<8x128xf32, #tpu.memory_space<vmem>>, %arg3: memref<128x128xf32, #tpu.memory_space<vmem>>, %arg4: memref<128x128xf32, #tpu.memory_space<vmem>>, %arg5: memref<1x128xf32, #tpu.memory_space<vmem>>, %arg6: memref<8x128xf32, #tpu.memory_space<vmem>>, %arg7: memref<8x128xf32, #tpu.memory_space<vmem>>, %arg8: memref<8x128xf32, #tpu.memory_space<vmem>>) attributes {dimension_semantics = [#tpu.dimension_semantics<parallel>, #tpu.dimension_semantics<arbitrary>], iteration_bounds = array<i64: 1, 1>, scalar_prefetch = 0 : i64, scratch_operands = 2 : i64, tpu.core_type = #tpu.core_type<tc>, window_params = [{transform_indices = @transform_0, window_bounds = array<i64: 8, 128>}, {transform_indices = @transform_1, window_bounds = array<i64: 128, 128>}, {transform_indices = @transform_2, window_bounds = array<i64: 128, 128>}, {transform_indices = @transform_3, window_bounds = array<i64: 1, 128>}, {transform_indices = @transform_4, window_bounds = array<i64: 8, 128>}]} {
    %c0_i32 = arith.constant 0 : i32
    %0 = arith.cmpi eq, %arg1, %c0_i32 : i32
    %1 = arith.extui %0 : i1 to i32
    %c0_i32_0 = arith.constant 0 : i32
    %2 = arith.cmpi ne, %1, %c0_i32_0 : i32
    scf.if %2 {
      %cst_20 = arith.constant 0xFF800000 : f32
      %30 = vector.broadcast %cst_20 : f32 to vector<8x128xf32>
      %c0_21 = arith.constant 0 : index
      %c0_22 = arith.constant 0 : index
      %31 = vector.load %arg7[%c0_21, %c0_22] : memref<8x128xf32, #tpu.memory_space<vmem>>, vector<8x128xf32>
      tpu.vector_store %arg7[%c0_21, %c0_22], %30 {strides = array<i32>} : memref<8x128xf32, #tpu.memory_space<vmem>>, vector<8x128xf32>,
      %cst_23 = arith.constant 0.000000e+00 : f32
      %32 = vector.broadcast %cst_23 : f32 to vector<8x128xf32>
      %c0_24 = arith.constant 0 : index
      %c0_25 = arith.constant 0 : index
      %33 = vector.load %arg8[%c0_24, %c0_25] : memref<8x128xf32, #tpu.memory_space<vmem>>, vector<8x128xf32>
      tpu.vector_store %arg8[%c0_24, %c0_25], %32 {strides = array<i32>} : memref<8x128xf32, #tpu.memory_space<vmem>>, vector<8x128xf32>,
    } else {
    }
    %c0 = arith.constant 0 : index
    %c0_1 = arith.constant 0 : index
    %3 = vector.load %arg2[%c0, %c0_1] : memref<8x128xf32, #tpu.memory_space<vmem>>, vector<8x128xf32>
    %c0_2 = arith.constant 0 : index
    %c0_3 = arith.constant 0 : index
    %4 = vector.load %arg3[%c0_2, %c0_3] : memref<128x128xf32, #tpu.memory_space<vmem>>, vector<128x128xf32>
    %cst = arith.constant dense<0.000000e+00> : vector<8x128xf32>
    %5 = tpu.matmul %3, %4, %cst {dimension_numbers = #tpu.dot_dimension_numbers<[1], [1], [0], [0], [0, 0, 1, 0], [], []>} : vector<8x128xf32>, vector<128x128xf32>, vector<8x128xf32> -> vector<8x128xf32>
    %c0_4 = arith.constant 0 : index
    %c0_5 = arith.constant 0 : index
    %6 = vector.load %arg5[%c0_4, %c0_5] : memref<1x128xf32, #tpu.memory_space<vmem>>, vector<1x128xf32>
    %7 = vector.broadcast %6 : vector<1x128xf32> to vector<8x128xf32>
    %8 = arith.addf %5, %7 : vector<8x128xf32>
    %c0_6 = arith.constant 0 : index
    %c0_7 = arith.constant 0 : index
    %9 = vector.load %arg7[%c0_6, %c0_7] : memref<8x128xf32, #tpu.memory_space<vmem>>, vector<8x128xf32>
    %cst_8 = arith.constant dense<0xFF800000> : vector<8xf32>
    %10 = vector.multi_reduction <maximumf>, %8, %cst_8 [1] : vector<8x128xf32> to vector<8xf32>
    %11 = vector.shape_cast %10 : vector<8xf32> to vector<8x1xf32>
    %12 = vector.broadcast %11 : vector<8x1xf32> to vector<8x128xf32>
    %13 = arith.maximumf %9, %12 : vector<8x128xf32>
    %14 = arith.subf %9, %13 : vector<8x128xf32>
    %15 = math.exp %14 : vector<8x128xf32>
    %16 = vector.extract_strided_slice %13 {offsets = [0, 0], sizes = [8, 1], strides = [1, 1]} : vector<8x128xf32> to vector<8x1xf32>
    %17 = vector.broadcast %16 : vector<8x1xf32> to vector<8x128xf32>
    %18 = arith.subf %8, %17 : vector<8x128xf32>
    %19 = math.exp %18 : vector<8x128xf32>
    %c0_9 = arith.constant 0 : index
    %c0_10 = arith.constant 0 : index
    %20 = vector.load %arg4[%c0_9, %c0_10] : memref<128x128xf32, #tpu.memory_space<vmem>>, vector<128x128xf32>
    %cst_11 = arith.constant dense<0.000000e+00> : vector<8x128xf32>
    %21 = tpu.matmul %19, %20, %cst_11 {dimension_numbers = #tpu.dot_dimension_numbers<[1], [0], [0], [1], [0, 0, 1, 1], [], []>} : vector<8x128xf32>, vector<128x128xf32>, vector<8x128xf32> -> vector<8x128xf32>
    %c0_12 = arith.constant 0 : index
    %c0_13 = arith.constant 0 : index
    %22 = vector.load %arg8[%c0_12, %c0_13] : memref<8x128xf32, #tpu.memory_space<vmem>>, vector<8x128xf32>
    %23 = arith.mulf %22, %15 : vector<8x128xf32>
    %24 = arith.addf %23, %21 : vector<8x128xf32>
    %c0_14 = arith.constant 0 : index
    %c0_15 = arith.constant 0 : index
    %25 = vector.load %arg8[%c0_14, %c0_15] : memref<8x128xf32, #tpu.memory_space<vmem>>, vector<8x128xf32>
    tpu.vector_store %arg8[%c0_14, %c0_15], %24 {strides = array<i32>} : memref<8x128xf32, #tpu.memory_space<vmem>>, vector<8x128xf32>,
    %c0_16 = arith.constant 0 : index
    %c0_17 = arith.constant 0 : index
    %26 = vector.load %arg7[%c0_16, %c0_17] : memref<8x128xf32, #tpu.memory_space<vmem>>, vector<8x128xf32>
    tpu.vector_store %arg7[%c0_16, %c0_17], %13 {strides = array<i32>} : memref<8x128xf32, #tpu.memory_space<vmem>>, vector<8x128xf32>,
    %c0_i32_18 = arith.constant 0 : i32
    %27 = arith.cmpi eq, %arg1, %c0_i32_18 : i32
    %28 = arith.extui %27 : i1 to i32
    %c0_i32_19 = arith.constant 0 : i32
    %29 = arith.cmpi ne, %28, %c0_i32_19 : i32
    scf.if %29 {
      %c0_20 = arith.constant 0 : index
      %c0_21 = arith.constant 0 : index
      %30 = vector.load %arg8[%c0_20, %c0_21] : memref<8x128xf32, #tpu.memory_space<vmem>>, vector<8x128xf32>
      %31 = vector.extract_strided_slice %30 {offsets = [0, 32], sizes = [8, 1], strides = [1, 1]} : vector<8x128xf32> to vector<8x1xf32>
      %32 = tpu.reciprocal %31 {approx = true} : vector<8x1xf32> -> vector<8x1xf32>
      %33 = vector.broadcast %32 : vector<8x1xf32> to vector<8x128xf32>
      %34 = arith.mulf %30, %33 : vector<8x128xf32>
      %c0_22 = arith.constant 0 : index
      %c0_23 = arith.constant 0 : index
      %35 = vector.load %arg6[%c0_22, %c0_23] : memref<8x128xf32, #tpu.memory_space<vmem>>, vector<8x128xf32>
      tpu.vector_store %arg6[%c0_22, %c0_23], %34 {strides = array<i32>} : memref<8x128xf32, #tpu.memory_space<vmem>>, vector<8x128xf32>,
    } else {
    }
    return
  }
  func.func @transform_0(%arg0: i32, %arg1: i32) -> (i32, i32) {
    %c0_i32 = arith.constant 0 : i32
    %c0_i32_0 = arith.constant 0 : i32
    return %arg0, %c0_i32 : i32, i32
  }
  func.func @transform_1(%arg0: i32, %arg1: i32) -> (i32, i32) {
    %c0_i32 = arith.constant 0 : i32
    %c0_i32_0 = arith.constant 0 : i32
    return %arg1, %c0_i32 : i32, i32
  }
  func.func @transform_2(%arg0: i32, %arg1: i32) -> (i32, i32) {
    %c0_i32 = arith.constant 0 : i32
    %c0_i32_0 = arith.constant 0 : i32
    return %arg1, %c0_i32 : i32, i32
  }
  func.func @transform_3(%arg0: i32, %arg1: i32) -> (i32, i32) {
    %c0_i32 = arith.constant 0 : i32
    %c0_i32_0 = arith.constant 0 : i32
    return %c0_i32, %arg1 : i32, i32
  }
  func.func @transform_4(%arg0: i32, %arg1: i32) -> (i32, i32) {
    %c0_i32 = arith.constant 0 : i32
    %c0_i32_0 = arith.constant 0 : i32
    return %arg0, %c0_i32 : i32, i32
  }
}

</mosaic_0001>

<bundles_post_ra>
// kernel: tpu_custom_call.1
= control target key start
LH: loop header
LB: loop body
LE: loop exit
PB: predicated region body
PF: predicated region fallthrough
CT: control target
= control target key end

     0   :  { %9 = vsyncpa [#allocation5], 0  ;;  %s364_s0 = inlined_call_operand.hbm [shape: f32[8,128], index: 0, kind: input, shape index: {}]   ;;  %s365_s1 = inlined_call_operand.hbm [shape: f32[128,128], index: 1, kind: input, shape index: {}]   ;;  %s366_s2 = inlined_call_operand.hbm [shape: f32[128,128], index: 2, kind: input, shape index: {}]   ;;  %s367_s3 = inlined_call_operand.vmem [shape: f32[1,128], index: 3, kind: input, shape index: {}]   ;;  %s368_s4 = inlined_call_operand.hbm [shape: f32[8,128], index: 4, kind: output, shape index: {}]  }
   0x1   :  { %10 = vsyncpa [#allocation8], 0  ;;  %s27_s17 = sshll.u32 %s365_s1, 4  ;;  %s28_s17 = int_to_ptr.hbm [resolvable:$true] %s27_s17 }
   0x2   :  { %11 = vsyncpa [#allocation6], 0  ;;  %s316_s18 = smov [#allocation7]   ;;  %s17_s22 = sshll.u32 %s364_s0, 4  ;;  %s18_s22 = int_to_ptr.hbm [resolvable:$true] %s17_s22 }
   0x3   :  { %s29_s19 = sshll.u32 %s316_s18, 4  ;;  %s317_s23 = smov 128   ;;  %s30_s19 = int_to_ptr.vmem [resolvable:$true] %s29_s19 }
   0x4   :  { %s318_s24 = smov 8   ;;  %s319_s25 = smov [#allocation4]  }
   0x5   :  { %35 = dma.hbm_to_vmem [thread:$0]  %s28_s17, 2048, %s30_s19, [#allocation8], %s317_s23, %s317_s23, %s318_s24  }
   0x6   :  { %s19_s26 = sshll.u32 %s319_s25, 4  ;;  %s40_s29 = sshll.u32 %s366_s2, 4  ;;  %s20_s26 = int_to_ptr.vmem [resolvable:$true] %s19_s26  ;;  %s41_s29 = int_to_ptr.hbm [resolvable:$true] %s40_s29 }
   0x7   :  { %22 = dma.hbm_to_vmem [thread:$0]  %s18_s22, 128, %s20_s26, [#allocation5]  }
   0x8   :  { %s320_s1 = smov [#allocation9]  }
   0x9   :  { %s42_s30 = sshll.u32 %s320_s1, 4  ;;  %s43_s30 = int_to_ptr.vmem [resolvable:$true] %s42_s30 }
   0xa   :  { %48 = dma.hbm_to_vmem [thread:$0]  %s41_s29, 2048, %s43_s30, [#allocation8], %s317_s23, %s317_s23, %s318_s24  }
   0xb   :  { %310 = dma.done.wait [#allocation5], 128  }
   0xc   :  { %311 = vsyncadd [#allocation5], 4294967168 }
   0xd   :  { %312 = dma.done.wait [#allocation8], 4096  }
   0xe   :  { %313 = vsyncadd [#allocation8], 4294963200  ;;  %v85_v0 = vld [vmem:[#allocation7 + $0x78] sm:$0xff]  ;;  %v84_v1 = vld [vmem:[#allocation7 + $0x70] sm:$0xff]  ;;  %v321_v17 = vmov 0   ;;  %v322_v42 = vmov 32  }
   0xf   :  { %90 = vmatpush.xpose.msra.mxu0 %v85_v0  ;;  %v83_v2 = vld [vmem:[#allocation7 + $0x68] sm:$0xff]  ;;  %v82_v3 = vld [vmem:[#allocation7 + $0x60] sm:$0xff]  ;;  %v81_v4 = vld [vmem:[#allocation7 + $0x58] sm:$0xff]  ;;  %204 = vset.pattern.permute.xlu0 %v321_v17  ;;  %s185_s8 = sshll.u32 %s368_s4, 4  ;;  %s186_s8 = int_to_ptr.hbm [resolvable:$true] %s185_s8 }
  0x10   :  { %v80_v5 = vld [vmem:[#allocation7 + $0x50] sm:$0xff]  ;;  %v79_v6 = vld [vmem:[#allocation7 + $0x48] sm:$0xff]  ;;  %v78_v7 = vld [vmem:[#allocation7 + $0x40] sm:$0xff]  ;;  %205 = vset.pattern.permute.xlu1 %v322_v42 }
  0x11   :  { %v77_v8 = vld [vmem:[#allocation7 + $0x38] sm:$0xff]  ;;  %v76_v9 = vld [vmem:[#allocation7 + $0x30] sm:$0xff]  ;;  %v75_v10 = vld [vmem:[#allocation7 + $0x28] sm:$0xff] }
  0x12   :  { %v74_v11 = vld [vmem:[#allocation7 + $0x20] sm:$0xff]  ;;  %v73_v12 = vld [vmem:[#allocation7 + $0x18] sm:$0xff]  ;;  %v72_v13 = vld [vmem:[#allocation7 + $0x10] sm:$0xff] }
  0x13   :  { %91 = vmatpush.xpose.msra.mxu0 %v84_v1  ;;  %v71_v14 = vld [vmem:[#allocation7 + $0x8] sm:$0xff]  ;;  %v70_v15 = vld [vmem:[#allocation7] sm:$0xff]  ;;  %v69_v16 = vld [vmem:[#allocation4] sm:$0xff] }
  0x14   :  { %v207_v18 = vld [vmem:[%s367_s3] ss:$0 sm:$0xff]  ;;  %v139_v22 = vld [vmem:[#allocation9 + $0x70] sm:$0xff]  ;;  %v138_v23 = vld [vmem:[#allocation9 + $0x68] sm:$0xff]  ;;  %s323_s3 = smov [#allocation10]  }
  0x15   :  { %v140_v21 = vld [vmem:[#allocation9 + $0x78] sm:$0xff]  ;;  %v137_v24 = vld [vmem:[#allocation9 + $0x60] sm:$0xff]  ;;  %v135_v26 = vld [vmem:[#allocation9 + $0x50] sm:$0xff]  ;;  %s183_s5 = sshll.u32 %s323_s3, 4  ;;  %s184_s5 = int_to_ptr.vmem [resolvable:$true] %s183_s5 }
  0x16   :  { %141 = vmatpush.msra.mxu1 %v140_v21  ;;  %v136_v25 = vld [vmem:[#allocation9 + $0x58] sm:$0xff]  ;;  %v134_v27 = vld [vmem:[#allocation9 + $0x48] sm:$0xff]  ;;  %v133_v28 = vld [vmem:[#allocation9 + $0x40] sm:$0xff] }
  0x17   :  { %92 = vmatpush.xpose.msra.mxu0 %v83_v2  ;;  %v132_v29 = vld [vmem:[#allocation9 + $0x38] sm:$0xff]  ;;  %v131_v30 = vld [vmem:[#allocation9 + $0x30] sm:$0xff]  ;;  %v130_v32 = vld [vmem:[#allocation9 + $0x28] sm:$0xff] }
  0x18   :  { %142 = vmatpush.msra.mxu1 %v139_v22  ;;  %v129_v33 = vld [vmem:[#allocation9 + $0x20] sm:$0xff]  ;;  %v128_v34 = vld [vmem:[#allocation9 + $0x18] sm:$0xff]  ;;  %v127_v35 = vld [vmem:[#allocation9 + $0x10] sm:$0xff] }
  0x19   :  { %v126_v36 = vld [vmem:[#allocation9 + $0x8] sm:$0xff]  ;;  %v125_v37 = vld [vmem:[#allocation9] sm:$0xff] }
  0x1a   :  { %143 = vmatpush.msra.mxu1 %v138_v23 }
  0x1b   :  { %93 = vmatpush.xpose.msra.mxu0 %v82_v3 }
  0x1c   :  { %144 = vmatpush.msra.mxu1 %v137_v24 }
  0x1e   :  { %145 = vmatpush.msra.mxu1 %v136_v25 }
  0x1f   :  { %94 = vmatpush.xpose.msra.mxu0 %v81_v4 }
  0x20   :  { %146 = vmatpush.msra.mxu1 %v135_v26 }
  0x22   :  { %147 = vmatpush.msra.mxu1 %v134_v27 }
  0x23   :  { %95 = vmatpush.xpose.msra.mxu0 %v80_v5 }
  0x24   :  { %148 = vmatpush.msra.mxu1 %v133_v28 }
  0x26   :  { %149 = vmatpush.msra.mxu1 %v132_v29 }
  0x27   :  { %96 = vmatpush.xpose.msra.mxu0 %v79_v6 }
  0x28   :  { %150 = vmatpush.msra.mxu1 %v131_v30 }
  0x2a   :  { %151 = vmatpush.msra.mxu1 %v130_v32 }
  0x2b   :  { %97 = vmatpush.xpose.msra.mxu0 %v78_v7 }
  0x2c   :  { %152 = vmatpush.msra.mxu1 %v129_v33 }
  0x2e   :  { %153 = vmatpush.msra.mxu1 %v128_v34 }
  0x2f   :  { %98 = vmatpush.xpose.msra.mxu0 %v77_v8 }
  0x30   :  { %154 = vmatpush.msra.mxu1 %v127_v35 }
  0x32   :  { %155 = vmatpush.msra.mxu1 %v126_v36 }
  0x33   :  { %99 = vmatpush.xpose.msra.mxu0 %v76_v9 }
  0x34   :  { %156 = vmatpush.msra.mxu1 %v125_v37 }
  0x37   :  { %100 = vmatpush.xpose.msra.mxu0 %v75_v10 }
  0x3b   :  { %101 = vmatpush.xpose.msra.mxu0 %v74_v11 }
  0x3f   :  { %102 = vmatpush.xpose.msra.mxu0 %v73_v12 }
  0x43   :  { %103 = vmatpush.xpose.msra.mxu0 %v72_v13 }
  0x47   :  { %104 = vmatpush.xpose.msra.mxu0 %v71_v14 }
  0x4b   :  { %105 = vmatpush.xpose.msra.mxu0 %v70_v15 }
  0x4e   :  { %106 = vmatmul.f32.vlgmr.msra.gmra.mxu0 %v69_v16 }
  0xcb   :  { %v107_v19 = vpop.f32.mrf.mxu0 }
  0xcc   :  { %v108_v20 = vadd.f32 %v207_v18, %v107_v19 }
  0xce   :  { %111 = vmax.xlane.f32.xlu0 %v108_v20 }
 0x141   :  { %v112_v31 = vpop.xlane.xlu0 %111 }
 0x142   :  { %119 = vperm.xlu0 %204, %v112_v31   ;;  %v114_v43 = vsub.f32 -inf, %v112_v31 }
 0x144   :  { %v115_v44 = vmul.f32 1.442695, %v114_v43 }
 0x14a   :  { %206 = vset.pattern.permute.xlu0 %v322_v42 }
 0x1b4   :  { %v120_v38 = vpop.permute.xlu0 %119 }
 0x1b5   :  { %v122_v39 = vsub.f32 %v108_v20, %v120_v38 }
 0x1b7   :  { %v123_v40 = vmul.f32 1.442695, %v122_v39 }
 0x1b9   :  { %208 = vpow2.f32 %v123_v40 }
 0x1ba   :  { %210 = vpow2.f32 %v115_v44 }
 0x1bf   :  { %v209_v41 = vpop.eup %208 }
 0x1c0   :  { %157 = vmatmul.f32.vlgmr.msra.gmra.mxu1 %v209_v41  ;;  %v211_v45 = vpop.eup %210 }
 0x1c1   :  { %v162_v46 = vmul.f32 0.0, %v211_v45 }
 0x23d   :  { %v158_v47 = vpop.f32.mrf.mxu1 }
 0x23e   :  { %v163_v48 = vadd.f32 %v162_v46, %v158_v47 }
 0x240   :  { %212 = vrcp.f32 %v163_v48 }
 0x246   :  { %v213_v49 = vpop.eup %212 }
 0x247   :  { %173 = vperm.xlu1 %205, %v213_v49  }
 0x2b9   :  { %v174_v50 = vpop.permute.xlu1 %173 }
 0x2ba   :  { %v176_v51 = vmul.f32 %v174_v50, %v163_v48 }
 0x2bc   :  { %177 = vst [vmem:[#allocation10] sm:$0xff] %v176_v51 }
 0x2bd   :  { %188 = dma.vmem_to_hbm [thread:$0]  %s184_s5, 128, %s186_s8, [#allocation6]  }
 0x2be   :  { %314 = dma.done.wait [#allocation6], 128  }
 0x2bf   :  { %315 = vsyncadd [#allocation6], 4294967168 }
 0x2c0   :  { %193 = vsyncpa [#allocation5], 1 }
 0x2c1   :  { %194 = vsyncpa [#allocation8], 1 }
 0x2c2   :  { %195 = vsyncpa [#allocation6], 1 }

</bundles_post_ra>
